<compile_context>
chip_gen: v7x
topology: tpu7x:2x2x1
jax: 0.10.0
libtpu: 0.0.40
codegen_flags: <defaults>
</compile_context>

<pallas_src>
import jax
import jax.numpy as jnp
from jax.experimental import pallas as pl
from jax.experimental.pallas import tpu as pltpu


def _logistic_kernel(x_ref, w1_ref, b1_ref, w2_ref, b2_ref, w3_ref, b3_ref, o_ref):
    x = x_ref[...]                                            # (1, T), batch on lanes

    # Layer 1: in_features = 1 -> rank-1 broadcast on the VPU (no MXU round-trip).
    h1 = jax.nn.sigmoid(w1_ref[...] * x + b1_ref[...])        # (10,1)*(1,T)+(10,1) -> (10,T)

    # Layer 2: 10 -> 100 on the MXU, f32 accumulation.
    h2 = jax.nn.sigmoid(
        jnp.dot(w2_ref[...], h1, preferred_element_type=jnp.float32) + b2_ref[...]
    )                                                          # (100,10)@(10,T)+(100,1) -> (100,T)

    # Layer 3: 100 -> 1 as broadcast-multiply + sublane reduction (lane-dense result).
    out = jnp.sum(w3_ref[...] * h2, axis=0, keepdims=True) + b3_ref[0, 0]   # (1,T)
    o_ref[...] = out.astype(o_ref.dtype)


def logistic_forward(x, params, *, tile_n=512):
    """x: (N, 1) float32. Returns (N, 1) float32."""
    w1, b1 = params["w1"], params["b1"]   # (10, 1), (10, 1)
    w2, b2 = params["w2"], params["b2"]   # (100, 10), (100, 1)
    w3, b3 = params["w3"], params["b3"]   # (100, 1), (1, 1)

    N = x.shape[0]
    # Lane tile: multiple of 128; don't over-pad tiny batches.
    tile_n = min(tile_n, pl.cdiv(N, 128) * 128)
    n_pad = pl.cdiv(N, tile_n) * tile_n

    # (N,1) -> pad -> (1, n_pad): batch on the lane axis (pure reshape, no data movement).
    xt = jnp.pad(x, ((0, n_pad - N), (0, 0))).reshape(1, n_pad)

    grid = (n_pad // tile_n,)

    out_t = pl.pallas_call(
        _logistic_kernel,
        out_shape=jax.ShapeDtypeStruct((1, n_pad), x.dtype),
        grid=grid,
        in_specs=[
            pl.BlockSpec((1, tile_n), lambda i: (0, i)),          # x tile (lane-dense)
            pl.BlockSpec((10, 1), lambda i: (0, 0)),              # w1 (resident)
            pl.BlockSpec((10, 1), lambda i: (0, 0)),              # b1 (resident)
            pl.BlockSpec((100, 10), lambda i: (0, 0)),            # w2 (resident)
            pl.BlockSpec((100, 1), lambda i: (0, 0)),             # b2 (resident)
            pl.BlockSpec((100, 1), lambda i: (0, 0)),             # w3 (resident)
            pl.BlockSpec(memory_space=pltpu.MemorySpace.SMEM),    # b3 scalar in SMEM
        ],
        out_specs=pl.BlockSpec((1, tile_n), lambda i: (0, i)),    # lane-dense output
        compiler_params=pltpu.CompilerParams(
            dimension_semantics=("parallel",),                    # megacore on v7x
        ),
    )(xt, w1, b1, w2, b2, w3, b3)

    return out_t.reshape(n_pad, 1)[:N]


def init_params(key):
    """PyTorch-Linear-style init: U(-1/sqrt(fan_in), 1/sqrt(fan_in)).
    Weights are stored (out_features, in_features); biases as (out_features, 1)."""
    ks = jax.random.split(key, 6)

    def lin(kw, kb, fan_in, fan_out):
        bound = 1.0 / jnp.sqrt(fan_in)
        w = jax.random.uniform(kw, (fan_out, fan_in), jnp.float32, -bound, bound)
        b = jax.random.uniform(kb, (fan_out, 1), jnp.float32, -bound, bound)
        return w, b

    w1, b1 = lin(ks[0], ks[1], 1, 10)      # (10,1), (10,1)
    w2, b2 = lin(ks[2], ks[3], 10, 100)    # (100,10), (100,1)
    w3, b3 = lin(ks[4], ks[5], 100, 1)     # (1,100), (1,1)
    return {"w1": w1, "b1": b1, "w2": w2, "b2": b2, "w3": w3.reshape(100, 1), "b3": b3}


def reference_forward(x, p):
    h1 = jax.nn.sigmoid(x @ p["w1"].T + p["b1"].T)     # (N,10)
    h2 = jax.nn.sigmoid(h1 @ p["w2"].T + p["b2"].T)    # (N,100)
    return h2 @ p["w3"] + p["b3"]                      # (N,1)


if __name__ == "__main__":
    key = jax.random.PRNGKey(0)
    k_param, k_x = jax.random.split(key)

    params = init_params(k_param)
    x = jax.random.normal(k_x, (8, 1), jnp.float32)    # batch=8, in_features=1

    out = logistic_forward(x, params)
    out = jax.block_until_ready(out)

    ref = reference_forward(x, params)
    assert out.shape == (8, 1), out.shape
    assert jnp.allclose(out, ref, atol=1e-5, rtol=1e-5), (out, ref)

    print("KERNEL_OK")
</pallas_src>

<mosaic_0001>
module attributes {stable_mosaic.version = 11 : i64} {
  func.func @_logistic_kernel(%arg0: i32, %arg1: memref<1x128xf32, #tpu.memory_space<vmem>>, %arg2: memref<10x1xf32, #tpu.memory_space<vmem>>, %arg3: memref<10x1xf32, #tpu.memory_space<vmem>>, %arg4: memref<100x10xf32, #tpu.memory_space<vmem>>, %arg5: memref<100x1xf32, #tpu.memory_space<vmem>>, %arg6: memref<100x1xf32, #tpu.memory_space<vmem>>, %arg7: memref<1x1xf32, #tpu.memory_space<smem>>, %arg8: memref<1x128xf32, #tpu.memory_space<vmem>>) attributes {dimension_semantics = [#tpu.dimension_semantics<parallel>], iteration_bounds = array<i64: 1>, scalar_prefetch = 0 : i64, scratch_operands = 0 : i64, tpu.core_type = #tpu.core_type<tc>, window_params = [{transform_indices = @transform_0, window_bounds = array<i64: 1, 128>}, {pipeline_mode = #tpu.pipeline_mode<synchronous>, transform_indices = @transform_1, window_bounds = array<i64: 10, 1>}, {pipeline_mode = #tpu.pipeline_mode<synchronous>, transform_indices = @transform_2, window_bounds = array<i64: 10, 1>}, {pipeline_mode = #tpu.pipeline_mode<synchronous>, transform_indices = @transform_3, window_bounds = array<i64: 100, 10>}, {pipeline_mode = #tpu.pipeline_mode<synchronous>, transform_indices = @transform_4, window_bounds = array<i64: 100, 1>}, {pipeline_mode = #tpu.pipeline_mode<synchronous>, transform_indices = @transform_5, window_bounds = array<i64: 100, 1>}, {transform_indices = @transform_6, window_bounds = array<i64: 1, 1>}, {transform_indices = @transform_7, window_bounds = array<i64: 1, 128>}]} {
    %c0 = arith.constant 0 : index
    %c0_0 = arith.constant 0 : index
    %0 = vector.load %arg1[%c0, %c0_0] : memref<1x128xf32, #tpu.memory_space<vmem>>, vector<1x128xf32>
    %c0_1 = arith.constant 0 : index
    %c0_2 = arith.constant 0 : index
    %1 = vector.load %arg2[%c0_1, %c0_2] : memref<10x1xf32, #tpu.memory_space<vmem>>, vector<10x1xf32>
    %2 = vector.broadcast %1 : vector<10x1xf32> to vector<10x128xf32>
    %3 = vector.broadcast %0 : vector<1x128xf32> to vector<10x128xf32>
    %4 = arith.mulf %2, %3 : vector<10x128xf32>
    %c0_3 = arith.constant 0 : index
    %c0_4 = arith.constant 0 : index
    %5 = vector.load %arg3[%c0_3, %c0_4] : memref<10x1xf32, #tpu.memory_space<vmem>>, vector<10x1xf32>
    %6 = vector.broadcast %5 : vector<10x1xf32> to vector<10x128xf32>
    %7 = arith.addf %4, %6 : vector<10x128xf32>
    %8 = arith.negf %7 : vector<10x128xf32>
    %9 = math.exp %8 : vector<10x128xf32>
    %cst = arith.constant 1.000000e+00 : f32
    %10 = vector.broadcast %cst : f32 to vector<10x128xf32>
    %11 = arith.addf %10, %9 : vector<10x128xf32>
    %12 = arith.divf %10, %11 : vector<10x128xf32>
    %c0_5 = arith.constant 0 : index
    %c0_6 = arith.constant 0 : index
    %13 = vector.load %arg4[%c0_5, %c0_6] : memref<100x10xf32, #tpu.memory_space<vmem>>, vector<100x10xf32>
    %cst_7 = arith.constant dense<0.000000e+00> : vector<100x128xf32>
    %14 = tpu.matmul %13, %12, %cst_7 {dimension_numbers = #tpu.dot_dimension_numbers<[1], [0], [0], [1], [0, 0, 1, 1], [], []>} : vector<100x10xf32>, vector<10x128xf32>, vector<100x128xf32> -> vector<100x128xf32>
    %c0_8 = arith.constant 0 : index
    %c0_9 = arith.constant 0 : index
    %15 = vector.load %arg5[%c0_8, %c0_9] : memref<100x1xf32, #tpu.memory_space<vmem>>, vector<100x1xf32>
    %16 = vector.broadcast %15 : vector<100x1xf32> to vector<100x128xf32>
    %17 = arith.addf %14, %16 : vector<100x128xf32>
    %18 = arith.negf %17 : vector<100x128xf32>
    %19 = math.exp %18 : vector<100x128xf32>
    %cst_10 = arith.constant 1.000000e+00 : f32
    %20 = vector.broadcast %cst_10 : f32 to vector<100x128xf32>
    %21 = arith.addf %20, %19 : vector<100x128xf32>
    %22 = arith.divf %20, %21 : vector<100x128xf32>
    %c0_11 = arith.constant 0 : index
    %c0_12 = arith.constant 0 : index
    %23 = vector.load %arg6[%c0_11, %c0_12] : memref<100x1xf32, #tpu.memory_space<vmem>>, vector<100x1xf32>
    %24 = vector.broadcast %23 : vector<100x1xf32> to vector<100x128xf32>
    %25 = arith.mulf %24, %22 : vector<100x128xf32>
    %cst_13 = arith.constant dense<0.000000e+00> : vector<128xf32>
    %26 = vector.multi_reduction <add>, %25, %cst_13 [0] : vector<100x128xf32> to vector<128xf32>
    %27 = vector.shape_cast %26 : vector<128xf32> to vector<1x128xf32>
    %c0_14 = arith.constant 0 : index
    %c0_15 = arith.constant 0 : index
    %28 = memref.load %arg7[%c0_14, %c0_15] : memref<1x1xf32, #tpu.memory_space<smem>>
    %29 = vector.broadcast %28 : f32 to vector<1x128xf32>
    %30 = arith.addf %27, %29 : vector<1x128xf32>
    %c0_16 = arith.constant 0 : index
    %c0_17 = arith.constant 0 : index
    %31 = vector.load %arg8[%c0_16, %c0_17] : memref<1x128xf32, #tpu.memory_space<vmem>>, vector<1x128xf32>
    tpu.vector_store %arg8[%c0_16, %c0_17], %30 {strides = array<i32>} : memref<1x128xf32, #tpu.memory_space<vmem>>, vector<1x128xf32>,
    return
  }
  func.func @transform_0(%arg0: i32) -> (i32, i32) {
    %c0_i32 = arith.constant 0 : i32
    %c0_i32_0 = arith.constant 0 : i32
    return %c0_i32, %arg0 : i32, i32
  }
  func.func @transform_1(%arg0: i32) -> (i32, i32) {
    %c0_i32 = arith.constant 0 : i32
    %c0_i32_0 = arith.constant 0 : i32
    %c0_i32_1 = arith.constant 0 : i32
    return %c0_i32, %c0_i32_0 : i32, i32
  }
  func.func @transform_2(%arg0: i32) -> (i32, i32) {
    %c0_i32 = arith.constant 0 : i32
    %c0_i32_0 = arith.constant 0 : i32
    %c0_i32_1 = arith.constant 0 : i32
    return %c0_i32, %c0_i32_0 : i32, i32
  }
  func.func @transform_3(%arg0: i32) -> (i32, i32) {
    %c0_i32 = arith.constant 0 : i32
    %c0_i32_0 = arith.constant 0 : i32
    %c0_i32_1 = arith.constant 0 : i32
    return %c0_i32, %c0_i32_0 : i32, i32
  }
  func.func @transform_4(%arg0: i32) -> (i32, i32) {
    %c0_i32 = arith.constant 0 : i32
    %c0_i32_0 = arith.constant 0 : i32
    %c0_i32_1 = arith.constant 0 : i32
    return %c0_i32, %c0_i32_0 : i32, i32
  }
  func.func @transform_5(%arg0: i32) -> (i32, i32) {
    %c0_i32 = arith.constant 0 : i32
    %c0_i32_0 = arith.constant 0 : i32
    %c0_i32_1 = arith.constant 0 : i32
    return %c0_i32, %c0_i32_0 : i32, i32
  }
  func.func @transform_6(%arg0: i32) -> (i32, i32) {
    %c0_i32 = arith.constant 0 : i32
    %c0_i32_0 = arith.constant 0 : i32
    %c0_i32_1 = arith.constant 0 : i32
    return %c0_i32, %c0_i32_0 : i32, i32
  }
  func.func @transform_7(%arg0: i32) -> (i32, i32) {
    %c0_i32 = arith.constant 0 : i32
    %c0_i32_0 = arith.constant 0 : i32
    return %c0_i32, %arg0 : i32, i32
  }
}

</mosaic_0001>

<bundles_post_ra>
// kernel: tpu_custom_call.1
= control target key start
LH: loop header
LB: loop body
LE: loop exit
PB: predicated region body
PF: predicated region fallthrough
CT: control target
= control target key end

     0   :  { %v733_v2 = vmov 0   ;;  %s968_s0 = inlined_call_operand.vmem [shape: f32[1,128], index: 0, kind: input, shape index: {}]   ;;  %s969_s1 = inlined_call_operand.vmem [shape: f32[10,1], index: 1, kind: input, shape index: {}]   ;;  %s970_s2 = inlined_call_operand.vmem [shape: f32[10,1], index: 2, kind: input, shape index: {}]   ;;  %s971_s3 = inlined_call_operand.vmem [shape: f32[100,10], index: 3, kind: input, shape index: {}]   ;;  %s972_s4 = inlined_call_operand.vmem [shape: f32[100,1], index: 4, kind: input, shape index: {}]   ;;  %s973_s5 = inlined_call_operand.vmem [shape: f32[100,1], index: 5, kind: input, shape index: {}]   ;;  %s974_s6 = inlined_call_operand.<no memory space> [shape: f32[1,1], index: 6, kind: input, shape index: {}]   ;;  %s975_s7 = inlined_call_operand.hbm [shape: f32[1,128], index: 7, kind: output, shape index: {}]  }
   0x1   :  { %v49_v0 = vld [vmem:[%s970_s2] sm:$0xff]  ;;  %648 = vset.pattern.permute.xlu1 %v733_v2  ;;  %647 = vset.pattern.permute.xlu0 %v733_v2  ;;  %v50_v3 = vld [vmem:[%s970_s2 + $0x8] sm:$0x3] }
   0x2   :  { %v29_v1 = vld [vmem:[%s969_s1] sm:$0xff]  ;;  %53 = vperm.xlu1 %648, %v49_v0   ;;  %v30_v4 = vld [vmem:[%s969_s1 + $0x8] sm:$0x3] }
   0x3   :  { %33 = vperm.xlu0 %647, %v29_v1   ;;  %v89_v5 = vld [vmem:[%s972_s4 + $0x8] sm:$0xff]  ;;  %v88_v6 = vld [vmem:[%s972_s4] sm:$0xff] }
   0x6   :  { %58 = vperm.xlu1 %648, %v50_v3  }
   0x7   :  { %38 = vperm.xlu0 %647, %v30_v4  }
   0xa   :  { %108 = vperm.xlu1 %648, %v89_v5  }
   0xb   :  { %103 = vperm.xlu0 %647, %v88_v6  }
   0xc   :  { %13 = vsyncpa [#allocation4], 0  ;;  %v91_v7 = vld [vmem:[%s972_s4 + $0x18] sm:$0xff]  ;;  %v90_v8 = vld [vmem:[%s972_s4 + $0x10] sm:$0xff]  ;;  %v734_v21 = vmov 0.0|0.0   ;;  %vm735_vm0 = vmmov 0  }
   0xd   :  { %v93_v9 = vld [vmem:[%s972_s4 + $0x28] sm:$0xff]  ;;  %v92_v10 = vld [vmem:[%s972_s4 + $0x20] sm:$0xff]  ;;  %v95_v11 = vld [vmem:[%s972_s4 + $0x38] sm:$0xff]  ;;  %635 = vmatprep.subr.bf16.mxu0 %v734_v21  ;;  %639 = vmatprep.subr.bf16.mxu1 %v734_v21  ;;  %v736_v24 = vmov 0.0   ;;  %vm206_vm1 = vcmask 1041408   ;;  %vm737_vm2 = vmmov 1  }
   0xe   :  { %118 = vperm.xlu1 %648, %v91_v7   ;;  %v94_v12 = vld [vmem:[%s972_s4 + $0x30] sm:$0xff]  ;;  %v97_v13 = vld [vmem:[%s972_s4 + $0x48] sm:$0xff]  ;;  %v96_v14 = vld [vmem:[%s972_s4 + $0x40] sm:$0xff]  ;;  %596 = vmatprep.mubr.msk.f32.mxu0 %vm735_vm0, %v736_v24  ;;  %vm166_vm4 = vcmask 80896   ;;  %vm520_vm5 = vcmask 1043456   ;;  %s738_s11 = smov [#allocation3]  }
   0xf   :  { %113 = vperm.xlu0 %647, %v90_v8   ;;  %v99_v15 = vld [vmem:[%s972_s4 + $0x58] sm:$0xff]  ;;  %v98_v16 = vld [vmem:[%s972_s4 + $0x50] sm:$0xff]  ;;  %v418_v17 = vld [vmem:[%s973_s5] sm:$0xff]  ;;  %617 = vmatprep.mubr.msk.f32.mxu1 %vm735_vm0, %v736_v24 }
  0x10   :  { %v100_v18 = vld [vmem:[%s972_s4 + $0x60] sm:$0xf]  ;;  %v420_v19 = vld [vmem:[%s973_s5 + $0x10] sm:$0xff]  ;;  %v419_v20 = vld [vmem:[%s973_s5 + $0x8] sm:$0xff] }
  0x11   :  { %v422_v22 = vld [vmem:[%s973_s5 + $0x20] sm:$0xff]  ;;  %v421_v23 = vld [vmem:[%s973_s5 + $0x18] sm:$0xff]  ;;  %v424_v25 = vld [vmem:[%s973_s5 + $0x30] sm:$0xff] }
  0x12   :  { %128 = vperm.xlu1 %648, %v93_v9   ;;  %v423_v26 = vld [vmem:[%s973_s5 + $0x28] sm:$0xff]  ;;  %v426_v27 = vld [vmem:[%s973_s5 + $0x40] sm:$0xff]  ;;  %v425_v28 = vld [vmem:[%s973_s5 + $0x38] sm:$0xff] }
  0x13   :  { %123 = vperm.xlu0 %647, %v92_v10   ;;  %v428_v29 = vld [vmem:[%s973_s5 + $0x50] sm:$0xff]  ;;  %v427_v30 = vld [vmem:[%s973_s5 + $0x48] sm:$0xff]  ;;  %v430_v31 = vld [vmem:[%s973_s5 + $0x60] sm:$0xf] }
  0x14   :  { %v429_v32 = vld [vmem:[%s973_s5 + $0x58] sm:$0xff]  ;;  %v547_v33 = vld [vmem:[%s968_s0] ss:$0 sm:$0xff]  ;;  %vm637_vm3 = vmpackc.low %vm206_vm1, %vm737_vm2  ;;  %s539_s0 = sshll.u32 %s738_s11, 4  ;;  %s540_s0 = int_to_ptr.vmem [resolvable:$true] %s539_s0 }
  0x15   :  { %v75_v51 = vld [vmem:[%s971_s3] sm:$0xff]  ;;  %v82_v52 = vld [vmem:[%s971_s3 + $0x38] sm:$0xff]  ;;  %v76_v53 = vld [vmem:[%s971_s3 + $0x8] sm:$0xff]  ;;  %s709_s5 = scalar_lea.vmem %s540_s0, 16  ;;  %s713_s12 = scalar_lea.vmem %s540_s0, 32 }
  0x16   :  { %138 = vperm.xlu1 %648, %v95_v11   ;;  %v83_v54 = vld [vmem:[%s971_s3 + $0x40] sm:$0xff]  ;;  %v77_v55 = vld [vmem:[%s971_s3 + $0x10] sm:$0xff]  ;;  %v84_v56 = vld [vmem:[%s971_s3 + $0x48] sm:$0xff]  ;;  %p710_p0 = scmp.ne.s32.totalorder %s540_s0, %s709_s5  ;;  %p714_p1 = scmp.lt.s32.totalorder %s540_s0, %s540_s0 }
  0x17   :  { %133 = vperm.xlu0 %647, %v94_v12   ;;  %v78_v57 = vld [vmem:[%s971_s3 + $0x18] sm:$0xff]  ;;  %v85_v58 = vld [vmem:[%s971_s3 + $0x50] sm:$0xff]  ;;  %v79_v59 = vld [vmem:[%s971_s3 + $0x20] sm:$0xff]  ;;  %p715_p2 = scmp.lt.s32.totalorder %s713_s12, %s709_s5 }
  0x18   :  { %v86_v60 = vld [vmem:[%s971_s3 + $0x58] sm:$0xff]  ;;  %v80_v61 = vld [vmem:[%s971_s3 + $0x28] sm:$0xff]  ;;  %v87_v62 = vld [vmem:[%s971_s3 + $0x60] sm:$0xf] }
  0x19   :  { %v81_v63 = vld [vmem:[%s971_s3 + $0x30] sm:$0xff]  ;;  %p716_p3 = por %p715_p2, %p714_p1 }
  0x1a   :  { %148 = vperm.xlu1 %648, %v97_v13  }
  0x1b   :  { %143 = vperm.xlu0 %647, %v96_v14   ;;  %p717_p4 = pnand %p716_p3, %p710_p0 }
  0x1e   :  { %158 = vperm.xlu1 %648, %v99_v15  }
  0x1f   :  { %153 = vperm.xlu0 %647, %v98_v16  }
  0x22   :  { %433 = vperm.xlu1 %648, %v418_v17  }
  0x23   :  { %163 = vperm.xlu0 %647, %v100_v18  }
  0x26   :  { %443 = vperm.xlu1 %648, %v420_v19  }
  0x27   :  { %438 = vperm.xlu0 %647, %v419_v20  }
  0x2a   :  { %453 = vperm.xlu1 %648, %v422_v22  }
  0x2b   :  { %448 = vperm.xlu0 %647, %v421_v23  }
  0x2e   :  { %463 = vperm.xlu1 %648, %v424_v25  }
  0x2f   :  { %458 = vperm.xlu0 %647, %v423_v26  }
  0x32   :  { %473 = vperm.xlu1 %648, %v426_v27  }
  0x33   :  { %468 = vperm.xlu0 %647, %v425_v28  }
  0x36   :  { %483 = vperm.xlu1 %648, %v428_v29  }
  0x37   :  { %478 = vperm.xlu0 %647, %v427_v30  }
  0x3a   :  { %493 = vperm.xlu1 %648, %v430_v31  }
  0x3b   :  { %488 = vperm.xlu0 %647, %v429_v32  }
  0x81   :  { %v54_v34 = vpop.permute.xlu1 %53 }
  0x82   :  { %v34_v35 = vpop.permute.xlu0 %33 }
  0x83   :  { %v47_v36 = vmul.f32 %v547_v33, %v34_v35 }
  0x85   :  { %v61_v37 = vadd.f32 %v54_v34, %v47_v36  ;;  %v59_v41 = vpop.permute.xlu1 %58 }
  0x86   :  { %v39_v38 = vpop.permute.xlu0 %38 }
  0x87   :  { %v548_v39 = vmul.f32 -1.442695, %v61_v37  ;;  %v48_v40 = vmul.f32 %v547_v33, %v39_v38 }
  0x89   :  { %649 = vpow2.f32 %v548_v39  ;;  %v62_v42 = vadd.f32 %v59_v41, %v48_v40  ;;  %v109_v1 = vpop.permute.xlu1 %108 }
  0x8a   :  { %v104_v0 = vpop.permute.xlu0 %103 }
  0x8b   :  { %v549_v43 = vmul.f32 -1.442695, %v62_v42 }
  0x8d   :  { %651 = vpow2.f32 %v549_v43  ;;  %v119_v3 = vpop.permute.xlu1 %118 }
  0x8e   :  { %v114_v2 = vpop.permute.xlu0 %113 }
  0x91   :  { %v129_v5 = vpop.permute.xlu1 %128 }
  0x92   :  { %v124_v4 = vpop.permute.xlu0 %123 }
  0x93   :  { %v650_v44 = vpop.eup %649 }
  0x94   :  { %v69_v45 = vadd.f32 1.0, %v650_v44 }
  0x95   :  { %v139_v12 = vpop.permute.xlu1 %138 }
  0x96   :  { %653 = vrcp.f32 %v69_v45  ;;  %v950_v6 = vpop.permute.xlu0 %133 }
  0x97   :  { %v652_v46 = vpop.eup %651 }
  0x98   :  { %v70_v47 = vadd.f32 1.0, %v652_v46 }
  0x99   :  { %v149_v26 = vpop.permute.xlu1 %148 }
  0x9a   :  { %655 = vrcp.f32 %v70_v47  ;;  %v144_v19 = vpop.permute.xlu0 %143 }
  0x9d   :  { %v159_v44 = vpop.permute.xlu1 %158 }
  0x9e   :  { %v154_v34 = vpop.permute.xlu0 %153 }
  0xa0   :  { %v654_v48 = vpop.eup %653 }
  0xa4   :  { %v656_v49 = vpop.eup %655 }
  0xa5   :  { %v636_v50 = vpack.c.bf16 %v656_v49, %v654_v48 }
  0xa7   :  { %638 = vmatpush3.bf16.msk.msra.mxu0 %vm637_vm3, %v636_v50  ;;  %640 = vmatpush3.bf16.msk.msra.mxu1 %vm637_vm3, %v636_v50 }
  0xaa   :  { %597 = vmatmul.mubr.msk.f32.vlgmr.msra.gmra.mrb[0].mxu0 %vm166_vm4, %v75_v51  ;;  %618 = vmatmul.mubr.msk.f32.vlgmr.msra.gmra.mrb[0].mxu1 %vm166_vm4, %v82_v52 }
  0xab   :  { %599 = vmatprep.mubr.msk.f32.mxu0 %vm735_vm0, %v736_v24  ;;  %620 = vmatprep.mubr.msk.f32.mxu1 %vm735_vm0, %v736_v24 }
  0xae   :  { %600 = vmatmul.mubr.msk.f32.gmra.mrb[2].mxu0 %vm166_vm4, %v76_v53  ;;  %621 = vmatmul.mubr.msk.f32.gmra.mrb[2].mxu1 %vm166_vm4, %v83_v54 }
  0xaf   :  { %602 = vmatprep.mubr.msk.f32.mxu0 %vm735_vm0, %v736_v24  ;;  %623 = vmatprep.mubr.msk.f32.mxu1 %vm735_vm0, %v736_v24 }
  0xb2   :  { %603 = vmatmul.mubr.msk.f32.gmra.mrb[4].mxu0 %vm166_vm4, %v77_v55  ;;  %624 = vmatmul.mubr.msk.f32.gmra.mrb[4].mxu1 %vm166_vm4, %v84_v56  ;;  %v164_v56 = vpop.permute.xlu0 %163 }
  0xb3   :  { %605 = vmatprep.mubr.msk.f32.mxu0 %vm735_vm0, %v736_v24  ;;  %626 = vmatprep.mubr.msk.f32.mxu1 %vm735_vm0, %v736_v24 }
  0xb6   :  { %606 = vmatmul.mubr.msk.f32.gmra.mrb[6].mxu0 %vm166_vm4, %v78_v57  ;;  %627 = vmatmul.mubr.msk.f32.gmra.mrb[6].mxu1 %vm166_vm4, %v85_v58 }
  0xb7   :  { %608 = vmatprep.mubr.msk.f32.mxu0 %vm735_vm0, %v736_v24  ;;  %629 = vmatprep.mubr.msk.f32.mxu1 %vm735_vm0, %v736_v24 }
  0xba   :  { %609 = vmatmul.mubr.msk.f32.gmra.mrb[8].mxu0 %vm166_vm4, %v79_v59  ;;  %630 = vmatmul.mubr.msk.f32.gmra.mrb[8].mxu1 %vm166_vm4, %v86_v60 }
  0xbb   :  { %611 = vmatprep.mubr.msk.f32.mxu0 %vm735_vm0, %v736_v24  ;;  %632 = vmatprep.mubr.msk.f32.mxu1 %vm735_vm0, %v736_v24 }
  0xbe   :  { %612 = vmatmul.mubr.msk.f32.gmra.mrb[10].mxu0 %vm166_vm4, %v80_v61  ;;  %633 = vmatmul.mubr.msk.f32.gmra.mrb[10].mxu1 %vm166_vm4, %v87_v62 }
  0xbf   :  { %614 = vmatprep.mubr.msk.f32.mxu0 %vm735_vm0, %v736_v24 }
  0xc2   :  { %615 = vmatmul.mubr.msk.f32.gmra.mrb[12].mxu0 %vm166_vm4, %v81_v63 }
 0x17d   :  { %v276_v7 = vpop.f32.mrb[0].mxu0  ;;  %v311_v8 = vpop.f32.mrb[0].mxu1 }
 0x17e   :  { %v277_v9 = vadd.f32 %v276_v7, %v104_v0  ;;  %v598_v10 = vpop.f32.mrb[1].mxu0  ;;  %v619_v11 = vpop.f32.mrb[1].mxu1  ;;  %v312_v37 = vadd.f32 %v311_v8, %v139_v12 }
 0x17f   :  { %v434_v0 = vpop.permute.xlu1 %433 }
 0x180   :  { %v564_v13 = vmul.f32 -1.442695, %v277_v9  ;;  %v571_v47 = vmul.f32 -1.442695, %v312_v37 }
 0x181   :  { %v281_v14 = vpop.f32.mrb[2].mxu0  ;;  %v316_v15 = vpop.f32.mrb[2].mxu1 }
 0x182   :  { %657 = vpow2.f32 %v564_v13  ;;  %v282_v16 = vadd.f32 %v281_v14, %v109_v1  ;;  %v601_v17 = vpop.f32.mrb[3].mxu0  ;;  %v622_v18 = vpop.f32.mrb[3].mxu1  ;;  %v317_v45 = vadd.f32 %v316_v15, %v144_v19 }
 0x183   :  { %v444_v13 = vpop.permute.xlu1 %443  ;;  %v439_v15 = vpop.permute.xlu0 %438 }
 0x184   :  { %v565_v20 = vmul.f32 -1.442695, %v282_v16  ;;  %v572_v57 = vmul.f32 -1.442695, %v317_v45 }
 0x185   :  { %v286_v21 = vpop.f32.mrb[4].mxu0  ;;  %v321_v22 = vpop.f32.mrb[4].mxu1 }
 0x186   :  { %659 = vpow2.f32 %v565_v20  ;;  %v287_v23 = vadd.f32 %v286_v21, %v114_v2  ;;  %v604_v24 = vpop.f32.mrb[5].mxu0  ;;  %v625_v25 = vpop.f32.mrb[5].mxu1  ;;  %v322_v49 = vadd.f32 %v321_v22, %v149_v26 }
 0x187   :  { %v454_v24 = vpop.permute.xlu1 %453 }
 0x188   :  { %v566_v27 = vmul.f32 -1.442695, %v287_v23  ;;  %v573_v61 = vmul.f32 -1.442695, %v322_v49 }
 0x189   :  { %v291_v28 = vpop.f32.mrb[6].mxu0  ;;  %v326_v29 = vpop.f32.mrb[6].mxu1 }
 0x18a   :  { %661 = vpow2.f32 %v566_v27  ;;  %v292_v30 = vadd.f32 %v291_v28, %v119_v3  ;;  %v607_v31 = vpop.f32.mrb[7].mxu0  ;;  %v628_v32 = vpop.f32.mrb[7].mxu1  ;;  %v327_v58 = vadd.f32 %v326_v29, %v154_v34 }
 0x18b   :  { %v449_v28 = vpop.permute.xlu0 %448 }
 0x18c   :  { %v658_v33 = vpop.eup %657  ;;  %v567_v35 = vmul.f32 -1.442695, %v292_v30 }
 0x18d   :  { %v379_v36 = vadd.f32 1.0, %v658_v33  ;;  %v296_v38 = vpop.f32.mrb[8].mxu0  ;;  %v331_v39 = vpop.f32.mrb[8].mxu1 }
 0x18e   :  { %663 = vpow2.f32 %v567_v35  ;;  %v297_v40 = vadd.f32 %v296_v38, %v124_v4  ;;  %v610_v41 = vpop.f32.mrb[9].mxu0  ;;  %v631_v42 = vpop.f32.mrb[9].mxu1  ;;  %v332_v1 = vadd.f32 %v331_v39, %v159_v44 }
 0x18f   :  { %665 = vrcp.f32 %v379_v36  ;;  %v464_v39 = vpop.permute.xlu1 %463  ;;  %v459_v42 = vpop.permute.xlu0 %458 }
 0x190   :  { %v660_v43 = vpop.eup %659  ;;  %v568_v46 = vmul.f32 -1.442695, %v297_v40  ;;  %v575_v10 = vmul.f32 -1.442695, %v332_v1 }
 0x191   :  { %v380_v48 = vadd.f32 1.0, %v660_v43  ;;  %v301_v50 = vpop.f32.mrb[10].mxu0  ;;  %v336_v51 = vpop.f32.mrb[10].mxu1 }
 0x192   :  { %667 = vpow2.f32 %v568_v46  ;;  %v302_v52 = vadd.f32 %v301_v50, %v129_v5  ;;  %v613_v53 = vpop.f32.mrb[11].mxu0  ;;  %v634_v54 = vpop.f32.mrb[11].mxu1  ;;  %v337_v62 = vadd.f32 %v336_v51, %v164_v56  ;;  %v574_v5 = vmul.f32 -1.442695, %v327_v58 }
 0x193   :  { %669 = vrcp.f32 %v380_v48  ;;  %v474_v49 = vpop.permute.xlu1 %473  ;;  %v469_v51 = vpop.permute.xlu0 %468 }
 0x194   :  { %v662_v55 = vpop.eup %661  ;;  %v569_v59 = vmul.f32 -1.442695, %v302_v52  ;;  %671 = vpow2.f32 %v571_v47  ;;  %v576_v9 = vmul.f32 -1.442695, %v337_v62 }
 0x195   :  { %v381_v60 = vadd.f32 1.0, %v662_v55  ;;  %v306_v63 = vpop.f32.mrb[12].mxu0 }
 0x196   :  { %673 = vpow2.f32 %v569_v59  ;;  %v307_v2 = vadd.f32 %v306_v63, %v950_v6  ;;  %v616_v3 = vpop.f32.mrb[13].mxu0 }
 0x197   :  { %675 = vrcp.f32 %v381_v60 }
 0x198   :  { %v664_v4 = vpop.eup %663  ;;  %677 = vpow2.f32 %v572_v57  ;;  %v570_v7 = vmul.f32 -1.442695, %v307_v2  ;;  %v484_v57 = vpop.permute.xlu1 %483 }
 0x199   :  { %679 = vpow2.f32 %v573_v61  ;;  %v382_v8 = vadd.f32 1.0, %v664_v4  ;;  %v666_v11 = vpop.eup %665  ;;  %v479_v61 = vpop.permute.xlu0 %478 }
 0x19a   :  { %681 = vpow2.f32 %v570_v7  ;;  %v496_v6 = vmul.f32 %v666_v11, %v434_v0 }
 0x19b   :  { %683 = vrcp.f32 %v382_v8 }
 0x19c   :  { %v668_v12 = vpop.eup %667  ;;  %685 = vpow2.f32 %v574_v5  ;;  %v494_v5 = vpop.permute.xlu1 %493 }
 0x19d   :  { %v670_v14 = vpop.eup %669  ;;  %v383_v16 = vadd.f32 1.0, %v668_v12  ;;  %687 = vpow2.f32 %v576_v9  ;;  %v489_v9 = vpop.permute.xlu0 %488 }
 0x19e   :  { %v497_v17 = vmul.f32 %v670_v14, %v439_v15  ;;  %689 = vpow2.f32 %v575_v10  ;;  %v672_v18 = vpop.eup %671 }
 0x19f   :  { %691 = vrcp.f32 %v383_v16  ;;  %v386_v25 = vadd.f32 1.0, %v672_v18 }
 0x1a0   :  { %v674_v19 = vpop.eup %673  ;;  %v509_v20 = vadd.f32 %v497_v17, %v496_v6 }
 0x1a1   :  { %v676_v21 = vpop.eup %675  ;;  %v384_v22 = vadd.f32 1.0, %v674_v19 }
 0x1a2   :  { %v678_v23 = vpop.eup %677  ;;  %v498_v26 = vmul.f32 %v676_v21, %v444_v13 }
 0x1a3   :  { %v680_v27 = vpop.eup %679  ;;  %693 = vrcp.f32 %v384_v22  ;;  %v387_v32 = vadd.f32 1.0, %v678_v23 }
 0x1a4   :  { %v682_v29 = vpop.eup %681  ;;  %v510_v30 = vadd.f32 %v509_v20, %v498_v26  ;;  %695 = vrcp.f32 %v386_v25  ;;  %v388_v37 = vadd.f32 1.0, %v680_v27  ;;  %v530_v20 = vstv %s974_s6 }
 0x1a5   :  { %v684_v31 = vpop.eup %683  ;;  %v385_v33 = vadd.f32 1.0, %v682_v29 }
 0x1a6   :  { %v686_v34 = vpop.eup %685  ;;  %v499_v35 = vmul.f32 %v684_v31, %v449_v28 }
 0x1a7   :  { %v688_v36 = vpop.eup %687  ;;  %697 = vrcp.f32 %v385_v33  ;;  %v389_v43 = vadd.f32 1.0, %v686_v34 }
 0x1a8   :  { %v690_v38 = vpop.eup %689  ;;  %v511_v40 = vadd.f32 %v510_v30, %v499_v35  ;;  %699 = vrcp.f32 %v387_v32  ;;  %v391_v45 = vadd.f32 1.0, %v688_v36 }
 0x1a9   :  { %v692_v41 = vpop.eup %691  ;;  %701 = vrcp.f32 %v388_v37  ;;  %v390_v46 = vadd.f32 1.0, %v690_v38 }
 0x1aa   :  { %v500_v44 = vmul.f32 %v692_v41, %v454_v24  ;;  %703 = vrcp.f32 %v389_v43 }
 0x1ab   :  { %705 = vrcp.f32 %v391_v45 }
 0x1ac   :  { %v512_v47 = vadd.f32 %v511_v40, %v500_v44  ;;  %707 = vrcp.f32 %v390_v46 }
 0x1ad   :  { %v694_v48 = vpop.eup %693 }
 0x1ae   :  { %v501_v50 = vmul.f32 %v694_v48, %v459_v42  ;;  %v696_v52 = vpop.eup %695 }
 0x1af   :  { %v503_v58 = vmul.f32 %v696_v52, %v469_v51 }
 0x1b0   :  { %v513_v53 = vadd.f32 %v512_v47, %v501_v50 }
 0x1b1   :  { %v698_v54 = vpop.eup %697 }
 0x1b2   :  { %v502_v55 = vmul.f32 %v698_v54, %v464_v39  ;;  %v700_v56 = vpop.eup %699 }
 0x1b3   :  { %v702_v60 = vpop.eup %701  ;;  %v504_v62 = vmul.f32 %v700_v56, %v474_v49 }
 0x1b4   :  { %v514_v59 = vadd.f32 %v513_v53, %v502_v55  ;;  %v704_v0 = vpop.eup %703  ;;  %v505_v2 = vmul.f32 %v702_v60, %v479_v61 }
 0x1b5   :  { %v706_v1 = vpop.eup %705  ;;  %v506_v7 = vmul.f32 %v704_v0, %v484_v57 }
 0x1b6   :  { %v515_v63 = vadd.f32 %v514_v59, %v503_v58  ;;  %v708_v4 = vpop.eup %707  ;;  %v508_v10 = vmul.f32 %v706_v1, %v494_v5 }
 0x1b7   :  { %v507_v11 = vmul.f32 %v708_v4, %v489_v9 }
 0x1b8   :  { %v516_v3 = vadd.f32 %v515_v63, %v504_v62  ;;  %v521_v14 = vsel %vm520_vm5, %v508_v10, 0.0 }
 0x1ba   :  { %v517_v8 = vadd.f32 %v516_v3, %v505_v2 }
 0x1bc   :  { %v518_v12 = vadd.f32 %v517_v8, %v506_v7 }
 0x1be   :  { %v519_v13 = vadd.f32 %v518_v12, %v507_v11 }
 0x1c0   :  { %v522_v15 = vadd.f32 %v521_v14, %v519_v13 }
 0x1c2   :  { %v523_v16 = vrot.slane %v522_v15, 4 }
 0x1c4   :  { %v524_v6 = vadd.f32 %v523_v16, %v522_v15 }
 0x1c6   :  { %v525_v17 = vrot.slane %v524_v6, 2 }
 0x1c8   :  { %v526_v18 = vadd.f32 %v525_v17, %v524_v6 }
 0x1ca   :  { %v527_v19 = vrot.slane %v526_v18, 1 }
 0x1cc   :  { %v528_v21 = vadd.f32 %v527_v19, %v526_v18 }
 0x1ce   :  { %v531_v22 = vadd.f32 %v530_v20, %v528_v21 }
 0x1d0   :  { %532 = vst [vmem:[#allocation3] sm:$0x1] %v531_v22 }
 0x1d1   :  { %720 = shalt.err (!%p717_p4)
}
 0x1d2   :  { %s721_s2 = scalar_lea.hbm %s975_s7, 16 }
 0x1d3   :  { %p722_p5 = scmp.ne.s32.totalorder %s975_s7, %s721_s2  ;;  %p725_p6 = scmp.lt.u32.totalorder %s721_s2, %s975_s7 }
 0x1d5   :  { %p727_p7 = pnand %p725_p6, %p722_p5 }
 0x1d7   :  { %730 = shalt.err (!%p727_p7)
}
 0x1d8   :  { %542 = dma.vmem_to_hbm [thread:$0]  %s540_s0, 16, %s975_s7, [#allocation4]  }
 0x1d9   :  { %731 = dma.done.wait [#allocation4], 16  }
 0x1da   :  { %732 = vsyncadd [#allocation4], 4294967280 }
 0x1db   :  { %546 = vsyncpa [#allocation4], 1 }

</bundles_post_ra>
